<compile_context>
chip_gen: v7x
topology: tpu7x:2x2x1
jax: 0.10.0
libtpu: 0.0.40
codegen_flags: <defaults>
</compile_context>

<pallas_src>
import functools

import jax
import jax.numpy as jnp
from jax.experimental import pallas as pl
from jax.experimental.pallas import tpu as pltpu

_LANES = 128
_SUBLANES = 8
_CHUNK_R = 512                      # rows per in-kernel compute chunk (256 KiB f32)
_TILE_BYTES = 4 * 1024 * 1024       # per-input per-pipeline-buffer DMA block
_VMEM_LIMIT = 32 * 1024 * 1024      # 2 in x 2 buf x 4 MiB = 16 MiB + headroom


def _round_up(x: int, m: int) -> int:
    return -(-x // m) * m


def _psnr_partial_kernel(pred_ref, true_ref, sse_ref, max_ref, min_ref, *,
                         rows: int, chunk_r: int, num_chunks: int,
                         blocks_per_split: int, need_mask: bool):
    c = pl.program_id(0)            # split (core) index        -- "parallel"
    i = pl.program_id(1)            # row-block within the split -- "arbitrary"
    tile_r = chunk_r * num_chunks

    @pl.when(i == 0)
    def _init():
        sse_ref[...] = jnp.zeros_like(sse_ref)
        max_ref[...] = jnp.full_like(max_ref, -jnp.inf)
        min_ref[...] = jnp.full_like(min_ref, jnp.inf)

    # Virtual (un-clamped) first row of this block; used only for masking so
    # clamped / duplicated blocks contribute exactly nothing.
    block_row0 = (c * blocks_per_split + i) * tile_r

    if need_mask:
        base_rows = (jax.lax.broadcasted_iota(jnp.int32, (chunk_r, _LANES), 0)
                     + block_row0)

    @pl.loop(0, num_chunks)
    def _chunk(j):
        r0 = pl.multiple_of(j * chunk_r, _SUBLANES)
        # Widen to f32 in-kernel: HBM traffic stays at native dtype.
        p = pred_ref[pl.ds(r0, chunk_r), :].astype(jnp.float32)
        t = true_ref[pl.ds(r0, chunk_r), :].astype(jnp.float32)
        d = p - t
        sq = d * d
        t_hi = t
        t_lo = t
        if need_mask:
            valid = (base_rows + r0) < rows
            sq = jnp.where(valid, sq, 0.0)
            t_hi = jnp.where(valid, t, -jnp.inf)
            t_lo = jnp.where(valid, t, jnp.inf)

        k = chunk_r // _SUBLANES
        # vreg-shaped partials: reduce only the leading axis (pure VPU adds /
        # maxes); the single cross-lane reduce happens in the wrapper.
        sse_ref[...] = sse_ref[...] + jnp.sum(
            sq.reshape(k, _SUBLANES, _LANES), axis=0)
        max_ref[...] = jnp.maximum(
            max_ref[...], jnp.max(t_hi.reshape(k, _SUBLANES, _LANES), axis=0))
        min_ref[...] = jnp.minimum(
            min_ref[...], jnp.min(t_lo.reshape(k, _SUBLANES, _LANES), axis=0))


def psnr_pallas(y_pred: jax.Array, y_true: jax.Array, *,
                tile_bytes: int = _TILE_BYTES) -> jax.Array:
    """Scalar PSNR over the whole batch (torchmetrics defaults)."""
    assert y_pred.shape == y_true.shape
    n = int(y_pred.size)
    assert n > 0

    p_flat = y_pred.reshape(-1)
    t_flat = y_true.reshape(-1)

    rows = n // _LANES
    rem = n - rows * _LANES

    if rem:
        # Lane tail (< 128 elements): plain jnp on a tiny slice.
        p_tail = p_flat[rows * _LANES:].astype(jnp.float32)
        t_tail = t_flat[rows * _LANES:].astype(jnp.float32)
        d_tail = p_tail - t_tail
        tail_sse = jnp.sum(d_tail * d_tail)
        tail_max = jnp.max(t_tail)
        tail_min = jnp.min(t_tail)

    if rows == 0:
        # Degenerate: fewer than 128 elements total -> tail covers everything.
        sse, tmax, tmin = tail_sse, tail_max, tail_min
    else:
        # Zero-copy reshape when n is a multiple of 128; otherwise only the
        # whole-lane-row prefix feeds the kernel (no full padding copy).
        p2 = (p_flat if rem == 0 else p_flat[: rows * _LANES]).reshape(rows, _LANES)
        t2 = (t_flat if rem == 0 else t_flat[: rows * _LANES]).reshape(rows, _LANES)

        itembytes = max(jnp.dtype(y_pred.dtype).itemsize,
                        jnp.dtype(y_true.dtype).itemsize)
        budget_rows = max(
            _CHUNK_R, (tile_bytes // (_LANES * itembytes)) // _CHUNK_R * _CHUNK_R)
        if rows >= _CHUNK_R:
            tile_r = min(budget_rows, _round_up(rows, _CHUNK_R))
            chunk_r = _CHUNK_R
        else:
            tile_r = _round_up(rows, _SUBLANES)
            chunk_r = tile_r
        num_chunks = tile_r // chunk_r

        grid_r = -(-rows // tile_r)              # real row-blocks
        splits = 2 if grid_r >= 2 else 1         # TODO(synk): query #cores
        bps = -(-grid_r // splits)               # blocks per split
        need_mask = (splits * bps * tile_r != rows)

        kernel = functools.partial(
            _psnr_partial_kernel, rows=rows, chunk_r=chunk_r,
            num_chunks=num_chunks, blocks_per_split=bps, need_mask=need_mask)

        def in_map(c, i):
            # Clamp so we never request a fully out-of-bounds block; the
            # in-kernel row mask (based on the UNclamped index) zeroes any
            # duplicated contribution.
            return (jnp.minimum(c * bps + i, grid_r - 1), 0)

        in_specs = [pl.BlockSpec((tile_r, _LANES), in_map),
                    pl.BlockSpec((tile_r, _LANES), in_map)]
        out_specs = tuple(
            pl.BlockSpec((None, _SUBLANES, _LANES), lambda c, i: (c, 0, 0))
            for _ in range(3))
        part = jax.ShapeDtypeStruct((splits, _SUBLANES, _LANES), jnp.float32)

        sse_p, max_p, min_p = pl.pallas_call(
            kernel,
            out_shape=(part, part, part),
            grid_spec=pltpu.PrefetchScalarGridSpec(
                num_scalar_prefetch=0,
                grid=(splits, bps),
                in_specs=in_specs,
                out_specs=out_specs,
            ),
            compiler_params=pltpu.CompilerParams(
                dimension_semantics=("parallel", "arbitrary"),
                vmem_limit_bytes=_VMEM_LIMIT),
        )(p2, t2)

        # Tiny cross-lane/sublane combine (a few KiB) done in plain jnp.
        sse = jnp.sum(sse_p)
        tmax = jnp.max(max_p)
        tmin = jnp.min(min_p)
        if rem:
            sse = sse + tail_sse
            tmax = jnp.maximum(tmax, tail_max)
            tmin = jnp.minimum(tmin, tail_min)

    mse = sse / n
    data_range = tmax - tmin
    return 10.0 * jnp.log10(data_range * data_range / mse)


def psnr_forward(x, y_pred, y_true, psf):
    """Mirrors PSNR.forward(x, y_pred, y_true, psf): x and psf are unused."""
    del x, psf
    return psnr_pallas(y_pred, y_true)


def _psnr_ref(y_pred, y_true):
    p = y_pred.astype(jnp.float32)
    t = y_true.astype(jnp.float32)
    mse = jnp.mean((p - t) ** 2)
    data_range = jnp.max(t) - jnp.min(t)
    return 10.0 * jnp.log10(data_range * data_range / mse)


if __name__ == "__main__":
    key = jax.random.PRNGKey(0)
    k1, k2, k3, k4 = jax.random.split(key, 4)

    B, C, H, W = 2, 4, 16, 16
    x = jax.random.uniform(k1, (B, C, H, W), dtype=jnp.float32)
    y_true = jax.random.uniform(k2, (B, C, H, W), dtype=jnp.float32)
    noise = 0.05 * jax.random.normal(k3, (B, C, H, W), dtype=jnp.float32)
    y_pred = y_true + noise
    psf = jax.random.uniform(k4, (1, 1, 5, 5), dtype=jnp.float32)

    val = jax.block_until_ready(psnr_forward(x, y_pred, y_true, psf))
    ref = _psnr_ref(y_pred, y_true)
    assert jnp.allclose(val, ref, rtol=1e-4, atol=1e-4), (val, ref)

    # Ragged size: lane tail (<128 elems) + in-kernel partial-block row mask.
    M2 = 3 * 5 * 17 * 19          # 4845, not a multiple of 128
    yt2 = jax.random.uniform(k2, (M2,), dtype=jnp.float32)
    yp2 = yt2 + 0.02 * jax.random.normal(k3, (M2,), dtype=jnp.float32)
    val2 = jax.block_until_ready(psnr_pallas(yp2, yt2))
    ref2 = _psnr_ref(yp2, yt2)
    assert jnp.allclose(val2, ref2, rtol=1e-4, atol=1e-4), (val2, ref2)

    # Multi-block path (small tile budget to force it at small size): >1
    # row-block, 2-way parallel split, clamped duplicate block, chunked loop.
    M3 = 2500 * 128 + 53
    yt3 = jax.random.uniform(k2, (M3,), dtype=jnp.float32)
    yp3 = yt3 + 0.01 * jax.random.normal(k3, (M3,), dtype=jnp.float32)
    val3 = jax.block_until_ready(psnr_pallas(yp3, yt3, tile_bytes=512 * 1024))
    ref3 = _psnr_ref(yp3, yt3)
    assert jnp.allclose(val3, ref3, rtol=1e-4, atol=1e-4), (val3, ref3)

    print("KERNEL_OK")
</pallas_src>

<mosaic_0001>
module attributes {stable_mosaic.version = 11 : i64} {
  func.func @_psnr_partial_kernel(%arg0: i32, %arg1: i32, %arg2: memref<16x128xf32, #tpu.memory_space<vmem>>, %arg3: memref<16x128xf32, #tpu.memory_space<vmem>>, %arg4: memref<1x8x128xf32, #tpu.memory_space<vmem>>, %arg5: memref<1x8x128xf32, #tpu.memory_space<vmem>>, %arg6: memref<1x8x128xf32, #tpu.memory_space<vmem>>) attributes {dimension_semantics = [#tpu.dimension_semantics<parallel>, #tpu.dimension_semantics<arbitrary>], iteration_bounds = array<i64: 1, 1>, scalar_prefetch = 0 : i64, scratch_operands = 0 : i64, tpu.core_type = #tpu.core_type<tc>, window_params = [{transform_indices = @transform_0, window_bounds = array<i64: 16, 128>}, {transform_indices = @transform_1, window_bounds = array<i64: 16, 128>}, {transform_indices = @transform_2, window_bounds = array<i64: 1, 8, 128>}, {transform_indices = @transform_3, window_bounds = array<i64: 1, 8, 128>}, {transform_indices = @transform_4, window_bounds = array<i64: 1, 8, 128>}]} {
    %c0_i32 = arith.constant 0 : i32
    %0 = arith.cmpi eq, %arg1, %c0_i32 : i32
    %1 = arith.extui %0 : i1 to i32
    %c0_i32_0 = arith.constant 0 : i32
    %2 = arith.cmpi ne, %1, %c0_i32_0 : i32
    scf.if %2 {
      %cst_25 = arith.constant 0.000000e+00 : f32
      %37 = vector.broadcast %cst_25 : f32 to vector<8x128xf32>
      %c0_26 = arith.constant 0 : index
      %c0_27 = arith.constant 0 : index
      %c0_28 = arith.constant 0 : index
      %38 = vector.load %arg4[%c0_26, %c0_27, %c0_28] : memref<1x8x128xf32, #tpu.memory_space<vmem>>, vector<1x8x128xf32>
      %39 = vector.shape_cast %38 : vector<1x8x128xf32> to vector<8x128xf32>
      %40 = vector.shape_cast %37 : vector<8x128xf32> to vector<1x8x128xf32>
      tpu.vector_store %arg4[%c0_26, %c0_27, %c0_28], %40 {strides = array<i32>} : memref<1x8x128xf32, #tpu.memory_space<vmem>>, vector<1x8x128xf32>,
      %cst_29 = arith.constant 0xFF800000 : f32
      %41 = vector.broadcast %cst_29 : f32 to vector<8x128xf32>
      %c0_30 = arith.constant 0 : index
      %c0_31 = arith.constant 0 : index
      %c0_32 = arith.constant 0 : index
      %42 = vector.load %arg5[%c0_30, %c0_31, %c0_32] : memref<1x8x128xf32, #tpu.memory_space<vmem>>, vector<1x8x128xf32>
      %43 = vector.shape_cast %42 : vector<1x8x128xf32> to vector<8x128xf32>
      %44 = vector.shape_cast %41 : vector<8x128xf32> to vector<1x8x128xf32>
      tpu.vector_store %arg5[%c0_30, %c0_31, %c0_32], %44 {strides = array<i32>} : memref<1x8x128xf32, #tpu.memory_space<vmem>>, vector<1x8x128xf32>,
      %cst_33 = arith.constant 0x7F800000 : f32
      %45 = vector.broadcast %cst_33 : f32 to vector<8x128xf32>
      %c0_34 = arith.constant 0 : index
      %c0_35 = arith.constant 0 : index
      %c0_36 = arith.constant 0 : index
      %46 = vector.load %arg6[%c0_34, %c0_35, %c0_36] : memref<1x8x128xf32, #tpu.memory_space<vmem>>, vector<1x8x128xf32>
      %47 = vector.shape_cast %46 : vector<1x8x128xf32> to vector<8x128xf32>
      %48 = vector.shape_cast %45 : vector<8x128xf32> to vector<1x8x128xf32>
      tpu.vector_store %arg6[%c0_34, %c0_35, %c0_36], %48 {strides = array<i32>} : memref<1x8x128xf32, #tpu.memory_space<vmem>>, vector<1x8x128xf32>,
    } else {
    }
    %c0_i32_1 = arith.constant 0 : i32
    %c1_i32 = arith.constant 1 : i32
    %3 = arith.muli %c0_i32_1, %c1_i32 : i32
    %c0_i32_2 = arith.constant 0 : i32
    %4 = arith.addi %c0_i32_2, %3 : i32
    %c16_i32 = arith.constant 16 : i32
    %5 = arith.muli %4, %c16_i32 : i32
    %6 = tpu.assume_multiple %5, 8 : i32
    %7 = arith.index_cast %6 : i32 to index
    %c0 = arith.constant 0 : index
    %8 = vector.load %arg2[%7, %c0] : memref<16x128xf32, #tpu.memory_space<vmem>>, vector<16x128xf32>
    %9 = arith.index_cast %6 : i32 to index
    %c0_3 = arith.constant 0 : index
    %10 = vector.load %arg3[%9, %c0_3] : memref<16x128xf32, #tpu.memory_space<vmem>>, vector<16x128xf32>
    %11 = arith.subf %8, %10 : vector<16x128xf32>
    %12 = arith.mulf %11, %11 : vector<16x128xf32>
    %c0_4 = arith.constant 0 : index
    %c0_5 = arith.constant 0 : index
    %c0_6 = arith.constant 0 : index
    %13 = vector.load %arg4[%c0_4, %c0_5, %c0_6] : memref<1x8x128xf32, #tpu.memory_space<vmem>>, vector<1x8x128xf32>
    %14 = vector.shape_cast %13 : vector<1x8x128xf32> to vector<8x128xf32>
    %15 = vector.shape_cast %12 : vector<16x128xf32> to vector<2x8x128xf32>
    %cst = arith.constant dense<0.000000e+00> : vector<8x128xf32>
    %16 = vector.multi_reduction <add>, %15, %cst [0] : vector<2x8x128xf32> to vector<8x128xf32>
    %17 = arith.addf %14, %16 : vector<8x128xf32>
    %c0_7 = arith.constant 0 : index
    %c0_8 = arith.constant 0 : index
    %c0_9 = arith.constant 0 : index
    %18 = vector.load %arg4[%c0_7, %c0_8, %c0_9] : memref<1x8x128xf32, #tpu.memory_space<vmem>>, vector<1x8x128xf32>
    %19 = vector.shape_cast %18 : vector<1x8x128xf32> to vector<8x128xf32>
    %20 = vector.shape_cast %17 : vector<8x128xf32> to vector<1x8x128xf32>
    tpu.vector_store %arg4[%c0_7, %c0_8, %c0_9], %20 {strides = array<i32>} : memref<1x8x128xf32, #tpu.memory_space<vmem>>, vector<1x8x128xf32>,
    %c0_10 = arith.constant 0 : index
    %c0_11 = arith.constant 0 : index
    %c0_12 = arith.constant 0 : index
    %21 = vector.load %arg5[%c0_10, %c0_11, %c0_12] : memref<1x8x128xf32, #tpu.memory_space<vmem>>, vector<1x8x128xf32>
    %22 = vector.shape_cast %21 : vector<1x8x128xf32> to vector<8x128xf32>
    %23 = vector.shape_cast %10 : vector<16x128xf32> to vector<2x8x128xf32>
    %cst_13 = arith.constant dense<0xFF800000> : vector<8x128xf32>
    %24 = vector.multi_reduction <maximumf>, %23, %cst_13 [0] : vector<2x8x128xf32> to vector<8x128xf32>
    %25 = arith.maximumf %22, %24 : vector<8x128xf32>
    %c0_14 = arith.constant 0 : index
    %c0_15 = arith.constant 0 : index
    %c0_16 = arith.constant 0 : index
    %26 = vector.load %arg5[%c0_14, %c0_15, %c0_16] : memref<1x8x128xf32, #tpu.memory_space<vmem>>, vector<1x8x128xf32>
    %27 = vector.shape_cast %26 : vector<1x8x128xf32> to vector<8x128xf32>
    %28 = vector.shape_cast %25 : vector<8x128xf32> to vector<1x8x128xf32>
    tpu.vector_store %arg5[%c0_14, %c0_15, %c0_16], %28 {strides = array<i32>} : memref<1x8x128xf32, #tpu.memory_space<vmem>>, vector<1x8x128xf32>,
    %c0_17 = arith.constant 0 : index
    %c0_18 = arith.constant 0 : index
    %c0_19 = arith.constant 0 : index
    %29 = vector.load %arg6[%c0_17, %c0_18, %c0_19] : memref<1x8x128xf32, #tpu.memory_space<vmem>>, vector<1x8x128xf32>
    %30 = vector.shape_cast %29 : vector<1x8x128xf32> to vector<8x128xf32>
    %31 = vector.shape_cast %10 : vector<16x128xf32> to vector<2x8x128xf32>
    %cst_20 = arith.constant dense<0x7F800000> : vector<8x128xf32>
    %32 = vector.multi_reduction <minimumf>, %31, %cst_20 [0] : vector<2x8x128xf32> to vector<8x128xf32>
    %33 = arith.minimumf %30, %32 : vector<8x128xf32>
    %c0_21 = arith.constant 0 : index
    %c0_22 = arith.constant 0 : index
    %c0_23 = arith.constant 0 : index
    %34 = vector.load %arg6[%c0_21, %c0_22, %c0_23] : memref<1x8x128xf32, #tpu.memory_space<vmem>>, vector<1x8x128xf32>
    %35 = vector.shape_cast %34 : vector<1x8x128xf32> to vector<8x128xf32>
    %36 = vector.shape_cast %33 : vector<8x128xf32> to vector<1x8x128xf32>
    tpu.vector_store %arg6[%c0_21, %c0_22, %c0_23], %36 {strides = array<i32>} : memref<1x8x128xf32, #tpu.memory_space<vmem>>, vector<1x8x128xf32>,
    %c1_i32_24 = arith.constant 1 : i32
    return
  }
  func.func @transform_0(%arg0: i32, %arg1: i32) -> (i32, i32) {
    %c1_i32 = arith.constant 1 : i32
    %0 = arith.muli %arg0, %c1_i32 : i32
    %1 = arith.addi %0, %arg1 : i32
    %c0_i32 = arith.constant 0 : i32
    %2 = arith.minsi %1, %c0_i32 : i32
    %c0_i32_0 = arith.constant 0 : i32
    %c0_i32_1 = arith.constant 0 : i32
    return %2, %c0_i32_0 : i32, i32
  }
  func.func @transform_1(%arg0: i32, %arg1: i32) -> (i32, i32) {
    %c1_i32 = arith.constant 1 : i32
    %0 = arith.muli %arg0, %c1_i32 : i32
    %1 = arith.addi %0, %arg1 : i32
    %c0_i32 = arith.constant 0 : i32
    %2 = arith.minsi %1, %c0_i32 : i32
    %c0_i32_0 = arith.constant 0 : i32
    %c0_i32_1 = arith.constant 0 : i32
    return %2, %c0_i32_0 : i32, i32
  }
  func.func @transform_2(%arg0: i32, %arg1: i32) -> (i32, i32, i32) {
    %c0_i32 = arith.constant 0 : i32
    %c0_i32_0 = arith.constant 0 : i32
    %c0_i32_1 = arith.constant 0 : i32
    return %arg0, %c0_i32, %c0_i32_0 : i32, i32, i32
  }
  func.func @transform_3(%arg0: i32, %arg1: i32) -> (i32, i32, i32) {
    %c0_i32 = arith.constant 0 : i32
    %c0_i32_0 = arith.constant 0 : i32
    %c0_i32_1 = arith.constant 0 : i32
    return %arg0, %c0_i32, %c0_i32_0 : i32, i32, i32
  }
  func.func @transform_4(%arg0: i32, %arg1: i32) -> (i32, i32, i32) {
    %c0_i32 = arith.constant 0 : i32
    %c0_i32_0 = arith.constant 0 : i32
    %c0_i32_1 = arith.constant 0 : i32
    return %arg0, %c0_i32, %c0_i32_0 : i32, i32, i32
  }
}

</mosaic_0001>

<bundles_post_ra>
// kernel: tpu_custom_call.1
= control target key start
LH: loop header
LB: loop body
LE: loop exit
PB: predicated region body
PF: predicated region fallthrough
CT: control target
= control target key end

     0   :  { %10 = vsyncpa [#allocation3], 0  ;;  %s365_s0 = inlined_call_operand.hbm [shape: f32[16,128], index: 0, kind: input, shape index: {}]   ;;  %s366_s1 = inlined_call_operand.hbm [shape: f32[16,128], index: 1, kind: input, shape index: {}]   ;;  %s367_s2 = inlined_call_operand.hbm [shape: f32[1,8,128], index: 2, kind: output, shape index: {0}]   ;;  %s368_s3 = inlined_call_operand.hbm [shape: f32[1,8,128], index: 3, kind: output, shape index: {1}]   ;;  %s369_s4 = inlined_call_operand.hbm [shape: f32[1,8,128], index: 4, kind: output, shape index: {2}]  }
   0x1   :  { %11 = vsyncpa [#allocation6], 0 }
   0x2   :  { %12 = vsyncpa [#allocation4], 0 }
   0x3   :  { %13 = vsyncpa [#allocation9], 0  ;;  %s266_s15 = smov [#allocation2]   ;;  %s148_s19 = scalar_lea.hbm %s365_s0, 256 }
   0x4   :  { %s25_s16 = sshll.u32 %s266_s15, 4  ;;  %p149_p0 = scmp.ne.s32.totalorder %s365_s0, %s148_s19  ;;  %s26_s16 = int_to_ptr.vmem [resolvable:$true] %s25_s16 }
   0x5   :  { %p152_p1 = scmp.lt.u32.totalorder %s148_s19, %s365_s0 }
   0x7   :  { %p154_p2 = pnand %p152_p1, %p149_p0 }
   0x9   :  { %157 = shalt.err (!%p154_p2)
}
   0xa   :  { %s158_s24 = scalar_lea.vmem %s26_s16, 256  ;;  %p163_p4 = scmp.lt.s32.totalorder %s26_s16, %s26_s16 }
   0xb   :  { %p159_p3 = scmp.ne.s32.totalorder %s26_s16, %s158_s24  ;;  %p164_p5 = scmp.lt.s32.totalorder %s158_s24, %s158_s24 }
   0xd   :  { %p165_p6 = por %p164_p5, %p163_p4 }
   0xf   :  { %p166_p7 = pnand %p165_p6, %p159_p3 }
  0x11   :  { %169 = shalt.err (!%p166_p7)
}
  0x12   :  { %s267_s25 = smov 128   ;;  %s268_s26 = smov 8  }
  0x13   :  { %31 = dma.hbm_to_vmem [thread:$0]  %s365_s0, 256, %s26_s16, [#allocation3], %s267_s25, %s267_s25, %s268_s26  }
  0x14   :  { %s269_s29 = smov [#allocation5]   ;;  %s170_s7 = scalar_lea.hbm %s366_s1, 256 }
  0x15   :  { %s43_s30 = sshll.u32 %s269_s29, 4  ;;  %p171_p8 = scmp.ne.s32.totalorder %s366_s1, %s170_s7  ;;  %s44_s30 = int_to_ptr.vmem [resolvable:$true] %s43_s30 }
  0x16   :  { %p174_p9 = scmp.lt.u32.totalorder %s170_s7, %s366_s1 }
  0x18   :  { %p176_p10 = pnand %p174_p9, %p171_p8 }
  0x1a   :  { %179 = shalt.err (!%p176_p10)
}
  0x1b   :  { %s180_s12 = scalar_lea.vmem %s44_s30, 256  ;;  %p185_p12 = scmp.lt.s32.totalorder %s44_s30, %s44_s30 }
  0x1c   :  { %p181_p11 = scmp.ne.s32.totalorder %s44_s30, %s180_s12  ;;  %p186_p13 = scmp.lt.s32.totalorder %s180_s12, %s180_s12 }
  0x1e   :  { %p187_p0 = por %p186_p13, %p185_p12 }
  0x20   :  { %p188_p1 = pnand %p187_p0, %p181_p11 }
  0x22   :  { %191 = shalt.err (!%p188_p1)
}
  0x23   :  { %49 = dma.hbm_to_vmem [thread:$0]  %s366_s1, 256, %s44_s30, [#allocation6], %s267_s25, %s267_s25, %s268_s26  }
  0x24   :  { %258 = dma.done.wait [#allocation3], 256  }
  0x25   :  { %259 = vsyncadd [#allocation3], 4294967040 }
  0x26   :  { %260 = dma.done.wait [#allocation6], 256  }
  0x27   :  { %261 = vsyncadd [#allocation6], 4294967040  ;;  %v73_v0 = vld [vmem:[#allocation5] sm:$0xff]  ;;  %v74_v1 = vld [vmem:[#allocation5 + $0x8] sm:$0xff]  ;;  %s270_s14 = smov [#allocation8]   ;;  %s271_s16 = smov [#allocation10]  }
  0x28   :  { %v71_v2 = vld [vmem:[#allocation2] sm:$0xff]  ;;  %s107_s15 = sshll.u32 %s270_s14, 4  ;;  %v84_v3 = vmax.f32 %v73_v0, %v74_v1  ;;  %v72_v4 = vld [vmem:[#allocation2 + $0x8] sm:$0xff]  ;;  %v88_v6 = vmin.f32 %v73_v0, %v74_v1  ;;  %s117_s17 = sshll.u32 %s271_s16, 4  ;;  %s108_s15 = int_to_ptr.vmem [resolvable:$true] %s107_s15  ;;  %s322_s17 = int_to_ptr.vmem [resolvable:$true] %s117_s17 }
  0x29   :  { %v75_v5 = vsub.f32 %v71_v2, %v73_v0  ;;  %v76_v7 = vsub.f32 %v72_v4, %v74_v1  ;;  %s272_s1 = smov [#allocation7]   ;;  %s192_s19 = scalar_lea.vmem %s108_s15, 128 }
  0x2a   :  { %86 = vst [vmem:[#allocation8] sm:$0xff] %v84_v3  ;;  %90 = vst [vmem:[#allocation10] sm:$0xff] %v88_v6  ;;  %s97_s18 = sshll.u32 %s272_s1, 4  ;;  %p193_p2 = scmp.ne.s32.totalorder %s108_s15, %s192_s19  ;;  %s98_s18 = int_to_ptr.vmem [resolvable:$true] %s97_s18 }
  0x2b   :  { %v77_v8 = vmul.f32 %v75_v5, %v75_v5  ;;  %v78_v9 = vmul.f32 %v76_v7, %v76_v7  ;;  %p197_p3 = scmp.lt.s32.totalorder %s108_s15, %s108_s15  ;;  %p198_p4 = scmp.lt.s32.totalorder %s192_s19, %s192_s19 }
  0x2d   :  { %v80_v10 = vadd.f32 %v78_v9, %v77_v8  ;;  %p199_p5 = por %p198_p4, %p197_p3 }
  0x2f   :  { %p200_p6 = pnand %p199_p5, %p193_p2 }
  0x31   :  { %203 = shalt.err (!%p200_p6)
}
  0x32   :  { %s204_s22 = scalar_lea.hbm %s368_s3, 128 }
  0x33   :  { %p205_p7 = scmp.ne.s32.totalorder %s368_s3, %s204_s22  ;;  %p208_p8 = scmp.lt.u32.totalorder %s204_s22, %s368_s3 }
  0x35   :  { %p210_p9 = pnand %p208_p8, %p205_p7 }
  0x37   :  { %213 = shalt.err (!%p210_p9)
}
  0x38   :  { %110 = dma.vmem_to_hbm [thread:$0]  %s108_s15, 128, %s368_s3, [#allocation9]  }
  0x39   :  { %s214_s29 = scalar_lea.vmem %s322_s17, 128  ;;  %p219_p11 = scmp.lt.s32.totalorder %s322_s17, %s322_s17 }
  0x3a   :  { %p215_p10 = scmp.ne.s32.totalorder %s322_s17, %s214_s29  ;;  %p220_p12 = scmp.lt.s32.totalorder %s214_s29, %s214_s29 }
  0x3c   :  { %p221_p13 = por %p220_p12, %p219_p11 }
  0x3e   :  { %p222_p0 = pnand %p221_p13, %p215_p10 }
  0x40   :  { %225 = shalt.err (!%p222_p0)
}
  0x41   :  { %s226_s6 = scalar_lea.hbm %s369_s4, 128 }
  0x42   :  { %p227_p1 = scmp.ne.s32.totalorder %s369_s4, %s226_s6  ;;  %p230_p2 = scmp.lt.u32.totalorder %s226_s6, %s369_s4 }
  0x44   :  { %p232_p3 = pnand %p230_p2, %p227_p1 }
  0x46   :  { %235 = shalt.err (!%p232_p3)
}
  0x47   :  { %120 = dma.vmem_to_hbm [thread:$0]  %s322_s17, 128, %s369_s4, [#allocation9]   ;;  %82 = vst [vmem:[#allocation7] sm:$0xff] %v80_v10 }
  0x48   :  { %s236_s12 = scalar_lea.vmem %s98_s18, 128  ;;  %p241_p5 = scmp.lt.s32.totalorder %s98_s18, %s98_s18 }
  0x49   :  { %p237_p4 = scmp.ne.s32.totalorder %s98_s18, %s236_s12  ;;  %p242_p6 = scmp.lt.s32.totalorder %s236_s12, %s236_s12 }
  0x4b   :  { %p243_p7 = por %p242_p6, %p241_p5 }
  0x4d   :  { %p244_p8 = pnand %p243_p7, %p237_p4 }
  0x4f   :  { %247 = shalt.err (!%p244_p8)
}
  0x50   :  { %s248_s14 = scalar_lea.hbm %s367_s2, 128 }
  0x51   :  { %p249_p9 = scmp.ne.s32.totalorder %s367_s2, %s248_s14  ;;  %p252_p10 = scmp.lt.u32.totalorder %s248_s14, %s367_s2 }
  0x53   :  { %p254_p11 = pnand %p252_p10, %p249_p9 }
  0x55   :  { %257 = shalt.err (!%p254_p11)
}
  0x56   :  { %100 = dma.vmem_to_hbm [thread:$0]  %s98_s18, 128, %s367_s2, [#allocation4]  }
  0x57   :  { %262 = dma.done.wait [#allocation4], 128  }
  0x58   :  { %263 = vsyncadd [#allocation4], 4294967168 }
  0x59   :  { %264 = dma.done.wait [#allocation9], 256  }
  0x5a   :  { %265 = vsyncadd [#allocation9], 4294967040 }
  0x5b   :  { %130 = vsyncpa [#allocation3], 1 }
  0x5c   :  { %131 = vsyncpa [#allocation6], 1 }
  0x5d   :  { %132 = vsyncpa [#allocation4], 1 }
  0x5e   :  { %133 = vsyncpa [#allocation9], 1 }

</bundles_post_ra>
